<compile_context>
chip_gen: v7x
topology: tpu7x:2x2x1
jax: 0.10.0
libtpu: 0.0.40
codegen_flags: <defaults>
</compile_context>

<pallas_src>
import jax
import jax.numpy as jnp
from jax.experimental import pallas as pl
from jax.experimental.pallas import tpu as pltpu

DIMS = [148, 256, 128, 64, 32, 1]


def _celu(x):
    # CELU with alpha=1.0 (PyTorch default): x if x > 0 else exp(x) - 1
    return jnp.where(x > 0, x, jnp.exp(jnp.minimum(x, 0.0)) - 1.0)


def mlp_kernel(x_ref,
               w1_ref, b1_ref,
               w2_ref, b2_ref,
               w3_ref, b3_ref,
               w4_ref, b4_ref,
               w5_ref, b5_ref,
               o_ref):
    # x tile: bf16 [TB, 148]; w1..w4: bf16 [in, out]; biases: f32 [1, out];
    # w5: f32 [1, 32] (row vector for the VPU final layer); b5: f32 [1, 1].
    h = jnp.dot(x_ref[...], w1_ref[...], preferred_element_type=jnp.float32)
    h = _celu(h + b1_ref[...])
    h = jnp.dot(h.astype(jnp.bfloat16), w2_ref[...],
                preferred_element_type=jnp.float32)
    h = _celu(h + b2_ref[...])
    h = jnp.dot(h.astype(jnp.bfloat16), w3_ref[...],
                preferred_element_type=jnp.float32)
    h = _celu(h + b3_ref[...])
    h = jnp.dot(h.astype(jnp.bfloat16), w4_ref[...],
                preferred_element_type=jnp.float32)
    h = _celu(h + b4_ref[...])
    # Final 32 -> 1 layer on the VPU (+ lane reduction): N=1 is a degenerate
    # MXU shape, and VPU/XLU slots are otherwise idle here.
    out = jnp.sum(h * w5_ref[...], axis=-1, keepdims=True) + b5_ref[...]
    o_ref[...] = out.astype(o_ref.dtype)


def mlp_forward(x, params, *, tb=1024):
    """x: [B, 148] float32. params: list of (W [in, out], b [1, out]) float32.

    Returns [B, 1] float32.
    """
    B, d_in = x.shape
    assert d_in == DIMS[0], (B, d_in)

    # Kernel-side dtypes: bf16 stream for x and the MXU weights, f32 biases,
    # f32 (1, 32) row for the final layer.
    x_bf16 = x.astype(jnp.bfloat16)
    kernel_params = []
    n_layers = len(params)
    for i, (w, b) in enumerate(params):
        if i < n_layers - 1:
            kernel_params.append((w.astype(jnp.bfloat16), b.astype(jnp.float32)))
        else:
            kernel_params.append((w.astype(jnp.float32).reshape(1, DIMS[-2]),
                                  b.astype(jnp.float32).reshape(1, 1)))

    # Batch tile: multiple of 8 sublanes; clamp for tiny B.
    tb = min(tb, max(8, pl.cdiv(B, 8) * 8))
    padded_b = pl.cdiv(B, tb) * tb
    if padded_b != B:
        x_bf16 = jnp.pad(x_bf16, ((0, padded_b - B), (0, 0)))
    num_tiles = padded_b // tb

    flat = []
    in_specs = [pl.BlockSpec((tb, DIMS[0]), lambda i: (i, 0))]
    for (w, b) in kernel_params:
        flat.extend([w, b])
        # Constant block index -> stays resident in VMEM across grid steps.
        in_specs.append(pl.BlockSpec(w.shape, lambda i: (0, 0)))
        in_specs.append(pl.BlockSpec(b.shape, lambda i: (0, 0)))

    out = pl.pallas_call(
        mlp_kernel,
        out_shape=jax.ShapeDtypeStruct((padded_b, 1), jnp.float32),
        grid=(num_tiles,),
        in_specs=in_specs,
        out_specs=pl.BlockSpec((tb, 1), lambda i: (i, 0)),
        compiler_params=pltpu.CompilerParams(
            dimension_semantics=("parallel",),
            vmem_limit_bytes=32 << 20,
        ),
    )(x_bf16, *flat)
    return out[:B]


def init_params(key):
    """Deterministic init matching torch.nn.Linear shapes (stored [in, out])."""
    params = []
    for i in range(len(DIMS) - 1):
        d_in, d_out = DIMS[i], DIMS[i + 1]
        key, kw, kb = jax.random.split(key, 3)
        bound = 1.0 / jnp.sqrt(d_in)
        w = jax.random.uniform(kw, (d_in, d_out), jnp.float32, -bound, bound)
        b = jax.random.uniform(kb, (1, d_out), jnp.float32, -bound, bound)
        params.append((w, b))
    return params


def reference_forward(x, params):
    """Pure-JAX reference with the same bf16-input / f32-accumulate math."""
    h = x.astype(jnp.bfloat16).astype(jnp.float32)
    n_layers = len(params)
    for i, (w, b) in enumerate(params):
        if i < n_layers - 1:
            h = jnp.dot(h.astype(jnp.bfloat16), w.astype(jnp.bfloat16),
                        preferred_element_type=jnp.float32) + b
            h = _celu(h)
        else:
            h = jnp.dot(h, w, preferred_element_type=jnp.float32) + b
    return h


if __name__ == "__main__":
    key = jax.random.PRNGKey(0)
    key, kx = jax.random.split(key)
    B = 8
    x = jax.random.normal(kx, (B, 148), jnp.float32)

    params = init_params(key)

    fwd = jax.jit(mlp_forward)
    out = fwd(x, params)
    out = jax.block_until_ready(out)

    ref = reference_forward(x, params)
    assert out.shape == (B, 1), out.shape
    assert jnp.allclose(out, ref, atol=2e-2, rtol=2e-2), (
        "mismatch vs pure-JAX reference")

    print("KERNEL_OK")
</pallas_src>

<mosaic_0001>
module attributes {stable_mosaic.version = 11 : i64} {
  func.func @mlp_kernel(%arg0: i32, %arg1: memref<8x148xbf16, #tpu.memory_space<vmem>>, %arg2: memref<148x256xbf16, #tpu.memory_space<vmem>>, %arg3: memref<1x256xf32, #tpu.memory_space<vmem>>, %arg4: memref<256x128xbf16, #tpu.memory_space<vmem>>, %arg5: memref<1x128xf32, #tpu.memory_space<vmem>>, %arg6: memref<128x64xbf16, #tpu.memory_space<vmem>>, %arg7: memref<1x64xf32, #tpu.memory_space<vmem>>, %arg8: memref<64x32xbf16, #tpu.memory_space<vmem>>, %arg9: memref<1x32xf32, #tpu.memory_space<vmem>>, %arg10: memref<1x32xf32, #tpu.memory_space<vmem>>, %arg11: memref<1x1xf32, #tpu.memory_space<vmem>>, %arg12: memref<8x1xf32, #tpu.memory_space<vmem>>) attributes {dimension_semantics = [#tpu.dimension_semantics<parallel>], iteration_bounds = array<i64: 1>, scalar_prefetch = 0 : i64, scratch_operands = 0 : i64, tpu.core_type = #tpu.core_type<tc>, window_params = [{transform_indices = @transform_0, window_bounds = array<i64: 8, 148>}, {pipeline_mode = #tpu.pipeline_mode<synchronous>, transform_indices = @transform_1, window_bounds = array<i64: 148, 256>}, {pipeline_mode = #tpu.pipeline_mode<synchronous>, transform_indices = @transform_2, window_bounds = array<i64: 1, 256>}, {pipeline_mode = #tpu.pipeline_mode<synchronous>, transform_indices = @transform_3, window_bounds = array<i64: 256, 128>}, {pipeline_mode = #tpu.pipeline_mode<synchronous>, transform_indices = @transform_4, window_bounds = array<i64: 1, 128>}, {pipeline_mode = #tpu.pipeline_mode<synchronous>, transform_indices = @transform_5, window_bounds = array<i64: 128, 64>}, {pipeline_mode = #tpu.pipeline_mode<synchronous>, transform_indices = @transform_6, window_bounds = array<i64: 1, 64>}, {pipeline_mode = #tpu.pipeline_mode<synchronous>, transform_indices = @transform_7, window_bounds = array<i64: 64, 32>}, {pipeline_mode = #tpu.pipeline_mode<synchronous>, transform_indices = @transform_8, window_bounds = array<i64: 1, 32>}, {pipeline_mode = #tpu.pipeline_mode<synchronous>, transform_indices = @transform_9, window_bounds = array<i64: 1, 32>}, {pipeline_mode = #tpu.pipeline_mode<synchronous>, transform_indices = @transform_10, window_bounds = array<i64: 1, 1>}, {transform_indices = @transform_11, window_bounds = array<i64: 8, 1>}]} {
    %c0 = arith.constant 0 : index
    %c0_0 = arith.constant 0 : index
    %0 = vector.load %arg1[%c0, %c0_0] : memref<8x148xbf16, #tpu.memory_space<vmem>>, vector<8x148xbf16>
    %c0_1 = arith.constant 0 : index
    %c0_2 = arith.constant 0 : index
    %1 = vector.load %arg2[%c0_1, %c0_2] : memref<148x256xbf16, #tpu.memory_space<vmem>>, vector<148x256xbf16>
    %cst = arith.constant dense<0.000000e+00> : vector<8x256xf32>
    %2 = tpu.matmul %0, %1, %cst {dimension_numbers = #tpu.dot_dimension_numbers<[1], [0], [0], [1], [0, 0, 1, 1], [], []>} : vector<8x148xbf16>, vector<148x256xbf16>, vector<8x256xf32> -> vector<8x256xf32>
    %c0_3 = arith.constant 0 : index
    %c0_4 = arith.constant 0 : index
    %3 = vector.load %arg3[%c0_3, %c0_4] : memref<1x256xf32, #tpu.memory_space<vmem>>, vector<1x256xf32>
    %4 = vector.broadcast %3 : vector<1x256xf32> to vector<8x256xf32>
    %5 = arith.addf %2, %4 : vector<8x256xf32>
    %cst_5 = arith.constant 0.000000e+00 : f32
    %6 = vector.broadcast %cst_5 : f32 to vector<8x256xf32>
    %7 = arith.cmpf ogt, %5, %6 : vector<8x256xf32>
    %cst_6 = arith.constant 0.000000e+00 : f32
    %8 = vector.broadcast %cst_6 : f32 to vector<8x256xf32>
    %9 = arith.minimumf %5, %8 : vector<8x256xf32>
    %10 = math.exp %9 : vector<8x256xf32>
    %cst_7 = arith.constant 1.000000e+00 : f32
    %11 = vector.broadcast %cst_7 : f32 to vector<8x256xf32>
    %12 = arith.subf %10, %11 : vector<8x256xf32>
    %13 = arith.select %7, %5, %12 : vector<8x256xi1>, vector<8x256xf32>
    %14 = arith.truncf %13 : vector<8x256xf32> to vector<8x256xbf16>
    %c0_8 = arith.constant 0 : index
    %c0_9 = arith.constant 0 : index
    %15 = vector.load %arg4[%c0_8, %c0_9] : memref<256x128xbf16, #tpu.memory_space<vmem>>, vector<256x128xbf16>
    %cst_10 = arith.constant dense<0.000000e+00> : vector<8x128xf32>
    %16 = tpu.matmul %14, %15, %cst_10 {dimension_numbers = #tpu.dot_dimension_numbers<[1], [0], [0], [1], [0, 0, 1, 1], [], []>} : vector<8x256xbf16>, vector<256x128xbf16>, vector<8x128xf32> -> vector<8x128xf32>
    %c0_11 = arith.constant 0 : index
    %c0_12 = arith.constant 0 : index
    %17 = vector.load %arg5[%c0_11, %c0_12] : memref<1x128xf32, #tpu.memory_space<vmem>>, vector<1x128xf32>
    %18 = vector.broadcast %17 : vector<1x128xf32> to vector<8x128xf32>
    %19 = arith.addf %16, %18 : vector<8x128xf32>
    %cst_13 = arith.constant 0.000000e+00 : f32
    %20 = vector.broadcast %cst_13 : f32 to vector<8x128xf32>
    %21 = arith.cmpf ogt, %19, %20 : vector<8x128xf32>
    %cst_14 = arith.constant 0.000000e+00 : f32
    %22 = vector.broadcast %cst_14 : f32 to vector<8x128xf32>
    %23 = arith.minimumf %19, %22 : vector<8x128xf32>
    %24 = math.exp %23 : vector<8x128xf32>
    %cst_15 = arith.constant 1.000000e+00 : f32
    %25 = vector.broadcast %cst_15 : f32 to vector<8x128xf32>
    %26 = arith.subf %24, %25 : vector<8x128xf32>
    %27 = arith.select %21, %19, %26 : vector<8x128xi1>, vector<8x128xf32>
    %28 = arith.truncf %27 : vector<8x128xf32> to vector<8x128xbf16>
    %c0_16 = arith.constant 0 : index
    %c0_17 = arith.constant 0 : index
    %29 = vector.load %arg6[%c0_16, %c0_17] : memref<128x64xbf16, #tpu.memory_space<vmem>>, vector<128x64xbf16>
    %cst_18 = arith.constant dense<0.000000e+00> : vector<8x64xf32>
    %30 = tpu.matmul %28, %29, %cst_18 {dimension_numbers = #tpu.dot_dimension_numbers<[1], [0], [0], [1], [0, 0, 1, 1], [], []>} : vector<8x128xbf16>, vector<128x64xbf16>, vector<8x64xf32> -> vector<8x64xf32>
    %c0_19 = arith.constant 0 : index
    %c0_20 = arith.constant 0 : index
    %31 = vector.load %arg7[%c0_19, %c0_20] : memref<1x64xf32, #tpu.memory_space<vmem>>, vector<1x64xf32>
    %32 = vector.broadcast %31 : vector<1x64xf32> to vector<8x64xf32>
    %33 = arith.addf %30, %32 : vector<8x64xf32>
    %cst_21 = arith.constant 0.000000e+00 : f32
    %34 = vector.broadcast %cst_21 : f32 to vector<8x64xf32>
    %35 = arith.cmpf ogt, %33, %34 : vector<8x64xf32>
    %cst_22 = arith.constant 0.000000e+00 : f32
    %36 = vector.broadcast %cst_22 : f32 to vector<8x64xf32>
    %37 = arith.minimumf %33, %36 : vector<8x64xf32>
    %38 = math.exp %37 : vector<8x64xf32>
    %cst_23 = arith.constant 1.000000e+00 : f32
    %39 = vector.broadcast %cst_23 : f32 to vector<8x64xf32>
    %40 = arith.subf %38, %39 : vector<8x64xf32>
    %41 = arith.select %35, %33, %40 : vector<8x64xi1>, vector<8x64xf32>
    %42 = arith.truncf %41 : vector<8x64xf32> to vector<8x64xbf16>
    %c0_24 = arith.constant 0 : index
    %c0_25 = arith.constant 0 : index
    %43 = vector.load %arg8[%c0_24, %c0_25] : memref<64x32xbf16, #tpu.memory_space<vmem>>, vector<64x32xbf16>
    %cst_26 = arith.constant dense<0.000000e+00> : vector<8x32xf32>
    %44 = tpu.matmul %42, %43, %cst_26 {dimension_numbers = #tpu.dot_dimension_numbers<[1], [0], [0], [1], [0, 0, 1, 1], [], []>} : vector<8x64xbf16>, vector<64x32xbf16>, vector<8x32xf32> -> vector<8x32xf32>
    %c0_27 = arith.constant 0 : index
    %c0_28 = arith.constant 0 : index
    %45 = vector.load %arg9[%c0_27, %c0_28] : memref<1x32xf32, #tpu.memory_space<vmem>>, vector<1x32xf32>
    %46 = vector.broadcast %45 : vector<1x32xf32> to vector<8x32xf32>
    %47 = arith.addf %44, %46 : vector<8x32xf32>
    %cst_29 = arith.constant 0.000000e+00 : f32
    %48 = vector.broadcast %cst_29 : f32 to vector<8x32xf32>
    %49 = arith.cmpf ogt, %47, %48 : vector<8x32xf32>
    %cst_30 = arith.constant 0.000000e+00 : f32
    %50 = vector.broadcast %cst_30 : f32 to vector<8x32xf32>
    %51 = arith.minimumf %47, %50 : vector<8x32xf32>
    %52 = math.exp %51 : vector<8x32xf32>
    %cst_31 = arith.constant 1.000000e+00 : f32
    %53 = vector.broadcast %cst_31 : f32 to vector<8x32xf32>
    %54 = arith.subf %52, %53 : vector<8x32xf32>
    %55 = arith.select %49, %47, %54 : vector<8x32xi1>, vector<8x32xf32>
    %c0_32 = arith.constant 0 : index
    %c0_33 = arith.constant 0 : index
    %56 = vector.load %arg10[%c0_32, %c0_33] : memref<1x32xf32, #tpu.memory_space<vmem>>, vector<1x32xf32>
    %57 = vector.broadcast %56 : vector<1x32xf32> to vector<8x32xf32>
    %58 = arith.mulf %55, %57 : vector<8x32xf32>
    %cst_34 = arith.constant dense<0.000000e+00> : vector<8xf32>
    %59 = vector.multi_reduction <add>, %58, %cst_34 [1] : vector<8x32xf32> to vector<8xf32>
    %60 = vector.shape_cast %59 : vector<8xf32> to vector<8x1xf32>
    %c0_35 = arith.constant 0 : index
    %c0_36 = arith.constant 0 : index
    %61 = vector.load %arg11[%c0_35, %c0_36] : memref<1x1xf32, #tpu.memory_space<vmem>>, vector<1x1xf32>
    %62 = vector.broadcast %61 : vector<1x1xf32> to vector<8x1xf32>
    %63 = arith.addf %60, %62 : vector<8x1xf32>
    %c0_37 = arith.constant 0 : index
    %c0_38 = arith.constant 0 : index
    %64 = vector.load %arg12[%c0_37, %c0_38] : memref<8x1xf32, #tpu.memory_space<vmem>>, vector<8x1xf32>
    tpu.vector_store %arg12[%c0_37, %c0_38], %63 {strides = array<i32>} : memref<8x1xf32, #tpu.memory_space<vmem>>, vector<8x1xf32>,
    return
  }
  func.func @transform_0(%arg0: i32) -> (i32, i32) {
    %c0_i32 = arith.constant 0 : i32
    %c0_i32_0 = arith.constant 0 : i32
    return %arg0, %c0_i32 : i32, i32
  }
  func.func @transform_1(%arg0: i32) -> (i32, i32) {
    %c0_i32 = arith.constant 0 : i32
    %c0_i32_0 = arith.constant 0 : i32
    %c0_i32_1 = arith.constant 0 : i32
    return %c0_i32, %c0_i32_0 : i32, i32
  }
  func.func @transform_2(%arg0: i32) -> (i32, i32) {
    %c0_i32 = arith.constant 0 : i32
    %c0_i32_0 = arith.constant 0 : i32
    %c0_i32_1 = arith.constant 0 : i32
    return %c0_i32, %c0_i32_0 : i32, i32
  }
  func.func @transform_3(%arg0: i32) -> (i32, i32) {
    %c0_i32 = arith.constant 0 : i32
    %c0_i32_0 = arith.constant 0 : i32
    %c0_i32_1 = arith.constant 0 : i32
    return %c0_i32, %c0_i32_0 : i32, i32
  }
  func.func @transform_4(%arg0: i32) -> (i32, i32) {
    %c0_i32 = arith.constant 0 : i32
    %c0_i32_0 = arith.constant 0 : i32
    %c0_i32_1 = arith.constant 0 : i32
    return %c0_i32, %c0_i32_0 : i32, i32
  }
  func.func @transform_5(%arg0: i32) -> (i32, i32) {
    %c0_i32 = arith.constant 0 : i32
    %c0_i32_0 = arith.constant 0 : i32
    %c0_i32_1 = arith.constant 0 : i32
    return %c0_i32, %c0_i32_0 : i32, i32
  }
  func.func @transform_6(%arg0: i32) -> (i32, i32) {
    %c0_i32 = arith.constant 0 : i32
    %c0_i32_0 = arith.constant 0 : i32
    %c0_i32_1 = arith.constant 0 : i32
    return %c0_i32, %c0_i32_0 : i32, i32
  }
  func.func @transform_7(%arg0: i32) -> (i32, i32) {
    %c0_i32 = arith.constant 0 : i32
    %c0_i32_0 = arith.constant 0 : i32
    %c0_i32_1 = arith.constant 0 : i32
    return %c0_i32, %c0_i32_0 : i32, i32
  }
  func.func @transform_8(%arg0: i32) -> (i32, i32) {
    %c0_i32 = arith.constant 0 : i32
    %c0_i32_0 = arith.constant 0 : i32
    %c0_i32_1 = arith.constant 0 : i32
    return %c0_i32, %c0_i32_0 : i32, i32
  }
  func.func @transform_9(%arg0: i32) -> (i32, i32) {
    %c0_i32 = arith.constant 0 : i32
    %c0_i32_0 = arith.constant 0 : i32
    %c0_i32_1 = arith.constant 0 : i32
    return %c0_i32, %c0_i32_0 : i32, i32
  }
  func.func @transform_10(%arg0: i32) -> (i32, i32) {
    %c0_i32 = arith.constant 0 : i32
    %c0_i32_0 = arith.constant 0 : i32
    %c0_i32_1 = arith.constant 0 : i32
    return %c0_i32, %c0_i32_0 : i32, i32
  }
  func.func @transform_11(%arg0: i32) -> (i32, i32) {
    %c0_i32 = arith.constant 0 : i32
    %c0_i32_0 = arith.constant 0 : i32
    return %arg0, %c0_i32 : i32, i32
  }
}

</mosaic_0001>

<bundles_post_ra>
// kernel: mlp_forward.1
= control target key start
LH: loop header
LB: loop body
LE: loop exit
PB: predicated region body
PF: predicated region fallthrough
CT: control target
= control target key end

     0   :  { %vm174_vm0 = vcmask 162816   ;;  %vm178_vm1 = vcmask 1041408   ;;  %v857_v41 = vmov 0.0   ;;  %v63_v42 = vlaneseq  ;;  %s1098_s1 = inlined_call_operand.vmem [shape: bf16[148,256], index: 1, kind: input, shape index: {}]   ;;  %s1099_s0 = inlined_call_operand.vmem [shape: bf16[8,148], index: 0, kind: input, shape index: {}]   ;;  %s1100_s3 = inlined_call_operand.vmem [shape: bf16[256,128], index: 3, kind: input, shape index: {}]   ;;  %s1101_s5 = inlined_call_operand.vmem [shape: bf16[128,64], index: 5, kind: input, shape index: {}]   ;;  %s1102_s2 = inlined_call_operand.vmem [shape: f32[1,256], index: 2, kind: input, shape index: {}]   ;;  %s1103_s4 = inlined_call_operand.vmem [shape: f32[1,128], index: 4, kind: input, shape index: {}]   ;;  %s1104_s7 = inlined_call_operand.vmem [shape: bf16[64,32], index: 7, kind: input, shape index: {}]   ;;  %s1105_s6 = inlined_call_operand.vmem [shape: f32[1,64], index: 6, kind: input, shape index: {}]   ;;  %s1106_s10 = inlined_call_operand.<no memory space> [shape: f32[1,1], index: 10, kind: input, shape index: {}]   ;;  %s1107_s8 = inlined_call_operand.vmem [shape: f32[1,32], index: 8, kind: input, shape index: {}]   ;;  %s1108_s9 = inlined_call_operand.vmem [shape: f32[1,32], index: 9, kind: input, shape index: {}]   ;;  %s1109_s11 = inlined_call_operand.vmem [shape: f32[8,1], index: 11, kind: output, shape index: {}]  }
   0x1   :  { %v788_v0 = vld [vmem:[%s1098_s1 + $0x4] ss:$8 sps:$4 sm:$0xff]   ;;  %v790_v1 = vld [vmem:[%s1098_s1] ss:$8 sps:$4 sm:$0xff]   ;;  %v791_v2 = vld [vmem:[%s1098_s1 + $0x14] ss:$8 sps:$4 sm:$0xff]  }
   0x2   :  { %185 = vmatprep.subr.bf16.mxu0 %v788_v0  ;;  %v793_v3 = vld [vmem:[%s1098_s1 + $0x10] ss:$8 sps:$4 sm:$0xff]   ;;  %v794_v4 = vld [vmem:[%s1098_s1 + $0x24] ss:$8 sps:$4 sm:$0xff]   ;;  %v796_v5 = vld [vmem:[%s1098_s1 + $0x20] ss:$8 sps:$4 sm:$0xff]  }
   0x3   :  { %186 = vmatpush1.bf16.msra.mxu0 %v790_v1  ;;  %v797_v6 = vld [vmem:[%s1098_s1 + $0x34] ss:$8 sps:$4 sm:$0xff]   ;;  %v799_v7 = vld [vmem:[%s1098_s1 + $0x30] ss:$8 sps:$4 sm:$0xff]   ;;  %v800_v8 = vld [vmem:[%s1098_s1 + $0x44] ss:$8 sps:$4 sm:$0xff]  }
   0x4   :  { %187 = vmatprep.subr.bf16.mxu0 %v791_v2  ;;  %v41_v9 = vld [vmem:[%s1099_s0] sm:$0xff]  ;;  %v821_v14 = vld [vmem:[%s1100_s3 + $0x48] sm:$0xff]   ;;  %v803_v15 = vld [vmem:[%s1098_s1 + $0x54] ss:$8 sps:$4 sm:$0xff]   ;;  %v64_v43 = vshrl.u32 %v63_v42, 7  ;;  %vm858_vm4 = vmmov 0  }
   0x5   :  { %v802_v10 = vld [vmem:[%s1098_s1 + $0x40] ss:$8 sps:$4 sm:$0xff]   ;;  %v656_v11 = vcombine.high %v41_v9, %v41_v9  ;;  %v805_v17 = vld [vmem:[%s1098_s1 + $0x50] ss:$8 sps:$4 sm:$0xff]   ;;  %v806_v18 = vld [vmem:[%s1098_s1 + $0x64] ss:$8 sps:$4 sm:$0xff]   ;;  %v655_v28 = vcombine.low %v41_v9, %v41_v9 }
   0x6   :  { %v819_v12 = vld [vmem:[%s1100_s3 + $0x40] sm:$0xff]   ;;  %v822_v16 = vld [vmem:[%s1100_s3 + $0x8] sm:$0xff]   ;;  %v809_v20 = vld [vmem:[%s1098_s1 + $0x74] ss:$8 sps:$4 sm:$0xff]   ;;  %v65_v44 = vsub.s32 0, %v64_v43  ;;  %v69_v46 = vsub.s32 1, %v64_v43 }
   0x7   :  { %188 = vmatpush1.bf16.msra.mxu0 %v793_v3  ;;  %v820_v13 = vld [vmem:[%s1100_s3] sm:$0xff]   ;;  %678 = vmatprep.mubr.msk.bf16.mxu0 %vm174_vm0, %v656_v11  ;;  %v811_v21 = vld [vmem:[%s1098_s1 + $0x70] ss:$8 sps:$4 sm:$0xff]   ;;  %v829_v35 = vld [vmem:[%s1100_s3 + $0x68] sm:$0xff]   ;;  %vm579_vm7 = vcmask 523264   ;;  %vm637_vm9 = vcmask 261120  }
   0x8   :  { %189 = vmatprep.subr.bf16.mxu0 %v794_v4  ;;  %718 = vmatprep.subr.bf16.mxu1 %v819_v12  ;;  %v808_v19 = vld [vmem:[%s1098_s1 + $0x60] ss:$8 sps:$4 sm:$0xff]   ;;  %v812_v22 = vld [vmem:[%s1098_s1 + $0x84] ss:$8 sps:$4 sm:$0xff]   ;;  %v60_v23 = vld [vmem:[%s1098_s1 + $0x90] sm:$0x33] }
   0x9   :  { %719 = vmatpush3.bf16.msra.mxu1 %v820_v13  ;;  %v814_v24 = vld [vmem:[%s1098_s1 + $0x80] ss:$8 sps:$4 sm:$0xff]   ;;  %v676_v25 = vcombine.high %v60_v23, %v60_v23  ;;  %v675_v26 = vcombine.low %v60_v23, %v60_v23  ;;  %v823_v29 = vld [vmem:[%s1100_s3 + $0x50] sm:$0xff]   ;;  %v825_v31 = vld [vmem:[%s1100_s3 + $0x58] sm:$0xff]   ;;  %vm649_vm10 = vcmask 7168  }
   0xa   :  { %720 = vmatprep.subr.bf16.mxu1 %v821_v14  ;;  %v824_v30 = vld [vmem:[%s1100_s3 + $0x10] sm:$0xff]   ;;  %v826_v32 = vld [vmem:[%s1100_s3 + $0x18] sm:$0xff]   ;;  %v827_v33 = vld [vmem:[%s1100_s3 + $0x60] sm:$0xff]  }
   0xb   :  { %190 = vmatpush1.bf16.msra.mxu0 %v796_v5  ;;  %v180_v27 = vsel %vm178_vm1, %v675_v26, 0  ;;  %v828_v34 = vld [vmem:[%s1100_s3 + $0x20] sm:$0xff]   ;;  %v830_v36 = vld [vmem:[%s1100_s3 + $0x28] sm:$0xff]   ;;  %v831_v37 = vld [vmem:[%s1100_s3 + $0x70] sm:$0xff]  }
   0xc   :  { %191 = vmatprep.subr.bf16.mxu0 %v797_v6  ;;  %v832_v38 = vld [vmem:[%s1100_s3 + $0x30] sm:$0xff]   ;;  %v833_v39 = vld [vmem:[%s1100_s3 + $0x78] sm:$0xff]   ;;  %v61_v45 = vld [vmem:[%s1102_s2] sm:$0x3] }
   0xd   :  { %721 = vmatpush3.bf16.msra.mxu1 %v822_v16  ;;  %v834_v40 = vld [vmem:[%s1100_s3 + $0x38] sm:$0xff]   ;;  %v66_v47 = vrot.slane %v61_v45, %v65_v44  ;;  %v70_v48 = vrot.slane %v61_v45, %v69_v46  ;;  %v835_v2 = vld [vmem:[%s1101_s5] sm:$0xff]   ;;  %v836_v4 = vld [vmem:[%s1101_s5 + $0x8] sm:$0xff]  }
   0xe   :  { %722 = vmatprep.subr.bf16.mxu1 %v823_v29  ;;  %v837_v5 = vld [vmem:[%s1101_s5 + $0x10] sm:$0xff]   ;;  %v838_v6 = vld [vmem:[%s1101_s5 + $0x18] sm:$0xff]   ;;  %v681_v12 = vld [vmem:[%s1103_s4] ss:$0 sm:$0xff] }
   0xf   :  { %192 = vmatpush1.bf16.msra.mxu0 %v799_v7  ;;  %v839_v7 = vld [vmem:[%s1101_s5 + $0x20] sm:$0xff]   ;;  %v841_v9 = vld [vmem:[%s1101_s5 + $0x30] sm:$0xff]  }
  0x10   :  { %193 = vmatprep.subr.bf16.mxu0 %v800_v8  ;;  %v840_v8 = vld [vmem:[%s1101_s5 + $0x28] sm:$0xff]   ;;  %v845_v26 = vld [vmem:[%s1104_s7 + $0x10] sm:$0xff]  }
  0x11   :  { %723 = vmatpush3.bf16.msra.mxu1 %v824_v30 }
  0x12   :  { %724 = vmatprep.subr.bf16.mxu1 %v825_v31 }
  0x13   :  { %194 = vmatpush1.bf16.msra.mxu0 %v802_v10  ;;  %v842_v10 = vld [vmem:[%s1101_s5 + $0x38] sm:$0xff]  }
  0x14   :  { %195 = vmatprep.subr.bf16.mxu0 %v803_v15 }
  0x15   :  { %725 = vmatpush3.bf16.msra.mxu1 %v826_v32 }
  0x16   :  { %726 = vmatprep.subr.bf16.mxu1 %v827_v33 }
  0x17   :  { %196 = vmatpush1.bf16.msra.mxu0 %v805_v17 }
  0x18   :  { %197 = vmatprep.subr.bf16.mxu0 %v806_v18 }
  0x19   :  { %727 = vmatpush3.bf16.msra.mxu1 %v828_v34 }
  0x1a   :  { %728 = vmatprep.subr.bf16.mxu1 %v829_v35 }
  0x1b   :  { %198 = vmatpush1.bf16.msra.mxu0 %v808_v19 }
  0x1c   :  { %199 = vmatprep.subr.bf16.mxu0 %v809_v20 }
  0x1d   :  { %729 = vmatpush3.bf16.msra.mxu1 %v830_v36 }
  0x1e   :  { %730 = vmatprep.subr.bf16.mxu1 %v831_v37 }
  0x1f   :  { %200 = vmatpush1.bf16.msra.mxu0 %v811_v21 }
  0x20   :  { %201 = vmatprep.subr.bf16.mxu0 %v812_v22 }
  0x21   :  { %731 = vmatpush3.bf16.msra.mxu1 %v832_v38 }
  0x22   :  { %732 = vmatprep.subr.bf16.mxu1 %v833_v39 }
  0x23   :  { %202 = vmatpush1.bf16.msra.mxu0 %v814_v24  ;;  %v843_v24 = vld [vmem:[%s1104_s7] sm:$0xff]  }
  0x24   :  { %677 = vmatprep.subr.msk.bf16.mxu0 %vm178_vm1, %v676_v25  ;;  %v844_v25 = vld [vmem:[%s1104_s7 + $0x8] sm:$0xff]  }
  0x25   :  { %733 = vmatpush3.bf16.msra.mxu1 %v834_v40  ;;  %v16_v40 = vstv %s1106_s10 }
  0x26   :  { %754 = vmatprep.subr.bf16.mxu1 %v857_v41  ;;  %17 = vst [vmem:[#allocation2] sm:$0x1] %v16_v40 }
  0x27   :  { %204 = vmatpush1.bf16.msra.mxu0 %v180_v27  ;;  %v846_v27 = vld [vmem:[%s1104_s7 + $0x18] sm:$0xff]  }
  0x28   :  { %774 = vmatprep.subr.bf16.mxu0 %v857_v41 }
  0x2a   :  { %218 = vmatmul.mubr.bf16.vlgmr.msra.gmra.mrb[0].mxu0 %v655_v28  ;;  %v699_v28 = vld [vmem:[%s1105_s6] ss:$0 sm:$0xff] }
  0x2b   :  { %782 = vmatprep.mubr.msk.bf16.mxu0 %vm858_vm4, %v857_v41  ;;  %775 = vmatpush3.bf16.msra.mxu0 %v843_v24 }
  0x2c   :  { %776 = vmatprep.subr.bf16.mxu0 %v857_v41 }
  0x2f   :  { %777 = vmatpush3.bf16.msra.mxu0 %v844_v25 }
  0x30   :  { %778 = vmatprep.subr.bf16.mxu0 %v857_v41 }
  0x33   :  { %779 = vmatpush3.bf16.msra.mxu0 %v845_v26 }
  0x34   :  { %780 = vmatprep.subr.bf16.mxu0 %v857_v41 }
  0x37   :  { %781 = vmatpush3.bf16.msra.mxu0 %v846_v27 }
  0xfd   :  { %v219_v49 = vpop.f32.mrb[0].mxu0 }
  0xfe   :  { %v220_v50 = vadd.f32 %v219_v49, %v66_v47  ;;  %v221_v51 = vpop.f32.mrb[1].mxu0 }
  0xff   :  { %v222_v52 = vadd.f32 %v221_v51, %v70_v48  ;;  %v223_v53 = vpop.f32.mrb[2].mxu0  ;;  %v716_v51 = vld [vmem:[%s1108_s9] ss:$0 sm:$0xff] }
 0x100   :  { %v228_v54 = vmin.f32 %v220_v50, 0.0  ;;  %v224_v55 = vpop.f32.mrb[3].mxu0  ;;  %vm226_vm2 = vcmp.gt.f32.partialorder %v220_v50, 0.0 }
 0x101   :  { %v229_v56 = vmin.f32 %v222_v52, 0.0  ;;  %vm227_vm3 = vcmp.gt.f32.partialorder %v222_v52, 0.0  ;;  %v717_v55 = vld [vmem:[#allocation2] ss:$0 sm:$0xff] }
 0x102   :  { %v230_v57 = vmul.f32 1.442695, %v228_v54 }
 0x103   :  { %v232_v58 = vmul.f32 1.442695, %v229_v56 }
 0x104   :  { %847 = vpow2.f32 %v230_v57 }
 0x105   :  { %849 = vpow2.f32 %v232_v58 }
 0x10e   :  { %v848_v59 = vpop.eup %847 }
 0x10f   :  { %v850_v60 = vpop.eup %849  ;;  %v679_v61 = vadd.f32 -1.0, %v848_v59 }
 0x110   :  { %v680_v62 = vadd.f32 -1.0, %v850_v60 }
 0x111   :  { %v236_v63 = vsel %vm226_vm2, %v220_v50, %v679_v61 }
 0x112   :  { %v237_v0 = vsel %vm227_vm3, %v222_v52, %v680_v62  ;;  %v238_v3 = vpack.c.bf16 %v236_v63, %v236_v63 }
 0x113   :  { %v239_v1 = vpack.c.bf16 %v237_v0, %v237_v0 }
 0x115   :  { %407 = vmatprep.mubr.bf16.mxu1 %v239_v1 }
 0x116   :  { %408 = vmatmul.mubr.bf16.vlgmr.msra.gmra.mrb[0].mxu1 %v238_v3 }
 0x117   :  { %755 = vmatpush3.bf16.msra.mxu1 %v835_v2  ;;  %770 = vmatprep.mubr.msk.bf16.mxu1 %vm858_vm4, %v857_v41 }
 0x118   :  { %756 = vmatprep.subr.bf16.mxu1 %v857_v41 }
 0x11b   :  { %757 = vmatpush3.bf16.msra.mxu1 %v836_v4 }
 0x11c   :  { %758 = vmatprep.subr.bf16.mxu1 %v857_v41 }
 0x11f   :  { %759 = vmatpush3.bf16.msra.mxu1 %v837_v5 }
 0x120   :  { %760 = vmatprep.subr.bf16.mxu1 %v857_v41 }
 0x123   :  { %761 = vmatpush3.bf16.msra.mxu1 %v838_v6 }
 0x124   :  { %762 = vmatprep.subr.bf16.mxu1 %v857_v41 }
 0x127   :  { %763 = vmatpush3.bf16.msra.mxu1 %v839_v7 }
 0x128   :  { %764 = vmatprep.subr.bf16.mxu1 %v857_v41 }
 0x12b   :  { %765 = vmatpush3.bf16.msra.mxu1 %v840_v8 }
 0x12c   :  { %766 = vmatprep.subr.bf16.mxu1 %v857_v41 }
 0x12f   :  { %767 = vmatpush3.bf16.msra.mxu1 %v841_v9 }
 0x130   :  { %768 = vmatprep.subr.bf16.mxu1 %v857_v41  ;;  %v709_v41 = vld [vmem:[%s1107_s8] ss:$0 sm:$0xff] }
 0x133   :  { %769 = vmatpush3.bf16.msra.mxu1 %v842_v10 }
 0x1e9   :  { %v734_v11 = vpop.f32.mrb[0].mxu1 }
 0x1ea   :  { %v735_v13 = vpop.f32.mrb[1].mxu1 }
 0x1eb   :  { %v736_v14 = vadd.f32 %v735_v13, %v734_v11  ;;  %v737_v15 = vpop.f32.mrb[2].mxu1 }
 0x1ec   :  { %v738_v16 = vpop.f32.mrb[3].mxu1 }
 0x1ed   :  { %v410_v17 = vadd.f32 %v736_v14, %v681_v12 }
 0x1ef   :  { %v416_v18 = vmin.f32 %v410_v17, 0.0  ;;  %vm415_vm5 = vcmp.gt.f32.partialorder %v410_v17, 0.0 }
 0x1f1   :  { %v417_v19 = vmul.f32 1.442695, %v416_v18 }
 0x1f3   :  { %851 = vpow2.f32 %v417_v19 }
 0x1fd   :  { %v852_v20 = vpop.eup %851 }
 0x1fe   :  { %v698_v21 = vadd.f32 -1.0, %v852_v20 }
 0x200   :  { %v420_v22 = vsel %vm415_vm5, %v410_v17, %v698_v21 }
 0x201   :  { %v421_v23 = vpack.c.bf16 %v420_v22, %v420_v22 }
 0x203   :  { %771 = vmatmul.mubr.bf16.vlgmr.msra.gmra.mrb[4].mxu1 %v421_v23 }
 0x2d6   :  { %v527_v29 = vpop.f32.mrb[4].mxu1 }
 0x2d7   :  { %v528_v30 = vadd.f32 %v699_v28, %v527_v29  ;;  %v772_v31 = vpop.f32.mrb[5].mxu1 }
 0x2d8   :  { %v530_v32 = vpop.f32.mrb[6].mxu1 }
 0x2d9   :  { %v534_v33 = vmin.f32 %v528_v30, 0.0  ;;  %v773_v34 = vpop.f32.mrb[7].mxu1  ;;  %vm533_vm6 = vcmp.gt.f32.partialorder %v528_v30, 0.0 }
 0x2db   :  { %v535_v35 = vmul.f32 1.442695, %v534_v33 }
 0x2dd   :  { %853 = vpow2.f32 %v535_v35 }
 0x2e7   :  { %v854_v36 = vpop.eup %853 }
 0x2e8   :  { %v708_v37 = vadd.f32 -1.0, %v854_v36 }
 0x2ea   :  { %v538_v38 = vsel %vm533_vm6, %v528_v30, %v708_v37 }
 0x2eb   :  { %v539_v39 = vpack.c.bf16 %v538_v38, %v538_v38 }
 0x2ed   :  { %783 = vmatmul.mubr.msk.bf16.vlgmr.msra.gmra.mrb[4].mxu0 %vm579_vm7, %v539_v39 }
 0x3c0   :  { %v617_v42 = vpop.f32.mrb[4].mxu0 }
 0x3c1   :  { %v618_v43 = vadd.f32 %v709_v41, %v617_v42  ;;  %v784_v44 = vpop.f32.mrb[5].mxu0 }
 0x3c2   :  { %v620_v45 = vpop.f32.mrb[6].mxu0 }
 0x3c3   :  { %v624_v46 = vmin.f32 %v618_v43, 0.0  ;;  %v785_v47 = vpop.f32.mrb[7].mxu0  ;;  %vm623_vm8 = vcmp.gt.f32.partialorder %v618_v43, 0.0 }
 0x3c5   :  { %v625_v48 = vmul.f32 1.442695, %v624_v46 }
 0x3c7   :  { %855 = vpow2.f32 %v625_v48 }
 0x3d1   :  { %v856_v49 = vpop.eup %855 }
 0x3d2   :  { %v715_v50 = vadd.f32 -1.0, %v856_v49 }
 0x3d4   :  { %v628_v52 = vsel %vm623_vm8, %v618_v43, %v715_v50 }
 0x3d5   :  { %v636_v53 = vmul.f32 %v716_v51, %v628_v52 }
 0x3d7   :  { %v638_v54 = vsel %vm637_vm9, %v636_v53, 0.0 }
 0x3d8   :  { %639 = vadd.xlane.f32.xlu0 %v638_v54 }
 0x465   :  { %v640_v56 = vpop.xlane.xlu0 %639 }
 0x466   :  { %v648_v57 = vadd.f32 %v717_v55, %v640_v56 }
 0x468   :  { %650 = vst.msk [vmem:[%s1109_s11] sm:$0xff] %vm649_vm10, %v648_v57 }

</bundles_post_ra>
